<compile_context>
chip_gen: v5e
topology: v5e:2x2
jax: 0.10.0
libtpu: 0.0.40
codegen_flags: <defaults>
</compile_context>

<pallas_src>
import functools

import jax
import jax.numpy as jnp
from jax.experimental import pallas as pl
from jax.experimental.pallas import tpu as pltpu


# ----------------------------------------------------------------------------
# shared in-kernel helpers
# ----------------------------------------------------------------------------
def _attention_core(q3, k3, v3, bias):
    """softmax(q·kᵀ + bias) · v.  q already carries the 1/sqrt(D) scale."""
    scores = jnp.einsum('bqd,bkd->bqk', q3, k3,
                        preferred_element_type=jnp.float32)
    scores = scores + bias                              # additive causal+pad bias
    smax = jnp.max(scores, axis=-1, keepdims=True)
    e = jnp.exp(scores - smax)
    p = e / jnp.sum(e, axis=-1, keepdims=True)          # exact divide (see review)
    return jnp.einsum('bqk,bkd->bqd', p.astype(jnp.bfloat16), v3,
                      preferred_element_type=jnp.float32)


def _mlp_partial(h_ref, acc_ref, w1_ref, b1_ref, w2_ref):
    """One F-tile of the MLP: acc += gelu(h @ W1[:,f] + b1[f]) @ W2[f,:]."""
    hb = h_ref[...].astype(jnp.bfloat16)
    ff = jnp.dot(hb, w1_ref[...], preferred_element_type=jnp.float32) + b1_ref[...]
    # TODO(synk): torch.nn.GELU defaults to exact erf; tanh approx used here.
    ff = jax.nn.gelu(ff)
    acc_ref[...] += jnp.dot(ff.astype(jnp.bfloat16), w2_ref[...],
                            preferred_element_type=jnp.float32)


# ----------------------------------------------------------------------------
# kernel A: index pooling ("last" / "marker") — only 2 pooled rows per example
# go through attention-out / Wo / MLP.
# ----------------------------------------------------------------------------
def _encoder_index_pool_kernel(bias_ref, x_ref, xp_ref,
                               wq_ref, wkv_ref, wo_ref,
                               w1_ref, b1_ref, w2_ref, b2_ref,
                               out_ref,
                               h_ref, acc_ref,
                               *, bt, seq_len, hidden_dim):
    Bt, S, D = bt, seq_len, hidden_dim
    M, P = Bt * S, 2 * Bt
    f = pl.program_id(1)

    @pl.when(f == 0)
    def _attention():
        xb = x_ref[...].reshape(M, D).astype(jnp.bfloat16)
        xp = xp_ref[...].reshape(P, D)                   # pooled rows, f32 residual
        # fused K|V projection over all rows: one MXU pass, N = 2D
        kv = jnp.dot(xb, wkv_ref[...], preferred_element_type=jnp.float32)
        k3 = kv[:, :D].reshape(Bt, S, D).astype(jnp.bfloat16)
        v3 = kv[:, D:].reshape(Bt, S, D).astype(jnp.bfloat16)
        # Q only for the 2 pooled rows per example (Wq carries 1/sqrt(D))
        q3 = jnp.dot(xp.astype(jnp.bfloat16), wq_ref[...],
                     preferred_element_type=jnp.float32)
        q3 = q3.reshape(Bt, 2, D).astype(jnp.bfloat16)
        ctx = _attention_core(q3, k3, v3, bias_ref[...])          # (Bt, 2, D)
        attn = jnp.dot(ctx.reshape(P, D).astype(jnp.bfloat16), wo_ref[...],
                       preferred_element_type=jnp.float32)
        h = xp + attn
        h_ref[...] = h
        acc_ref[...] = h                                 # residual folded into acc

    _mlp_partial(h_ref, acc_ref, w1_ref, b1_ref, w2_ref)

    @pl.when(f == pl.num_programs(1) - 1)
    def _finalize():
        hidden = (acc_ref[...] + b2_ref[...]).reshape(Bt, 2, D)
        out_ref[...] = 0.5 * (hidden[:, 0:1, :] + hidden[:, 1:2, :])


# ----------------------------------------------------------------------------
# kernel B: mean pooling (is_des=True) — needs all rows' hidden states.
# ----------------------------------------------------------------------------
def _encoder_mean_pool_kernel(causal_ref, keyb_ref, x_ref,
                              wqkv_ref, wo_ref,
                              w1_ref, b1_ref, w2_ref, b2_ref,
                              out_ref,
                              h_ref, acc_ref,
                              *, bt, seq_len, hidden_dim):
    Bt, S, D = bt, seq_len, hidden_dim
    M = Bt * S
    f = pl.program_id(1)

    @pl.when(f == 0)
    def _attention():
        x = x_ref[...].reshape(M, D)
        xb = x.astype(jnp.bfloat16)
        # fused Q|K|V projection: one MXU pass, N = 3D (Wq carries 1/sqrt(D))
        qkv = jnp.dot(xb, wqkv_ref[...], preferred_element_type=jnp.float32)
        q3 = qkv[:, :D].reshape(Bt, S, D).astype(jnp.bfloat16)
        k3 = qkv[:, D:2 * D].reshape(Bt, S, D).astype(jnp.bfloat16)
        v3 = qkv[:, 2 * D:].reshape(Bt, S, D).astype(jnp.bfloat16)
        bias = causal_ref[...] + keyb_ref[...]           # (1,S,S)+(Bt,1,S)
        ctx = _attention_core(q3, k3, v3, bias)          # (Bt, S, D)
        attn = jnp.dot(ctx.reshape(M, D).astype(jnp.bfloat16), wo_ref[...],
                       preferred_element_type=jnp.float32)
        h = x + attn
        h_ref[...] = h
        acc_ref[...] = h

    _mlp_partial(h_ref, acc_ref, w1_ref, b1_ref, w2_ref)

    @pl.when(f == pl.num_programs(1) - 1)
    def _finalize():
        hidden = (acc_ref[...] + b2_ref[...]).reshape(Bt, S, D)
        out_ref[...] = jnp.mean(hidden, axis=1, keepdims=True)


# ----------------------------------------------------------------------------
# wrapper
# ----------------------------------------------------------------------------
def _default_batch_block(batch):
    """One grid step per TensorCore: full batch per step on 1-TC chips
    (v5e/v6e); batch // num_TC on multi-TC chips (v7x) so megacore sharding
    keeps both cores busy."""
    n_tc = 1
    try:
        info = pltpu.get_tpu_info()
        for attr in ("num_cores", "num_tensorcores", "tensorcores_per_chip",
                     "cores_per_chip"):
            v = getattr(info, attr, None)
            if isinstance(v, int) and v > 0:
                n_tc = v
                break
    except Exception:
        pass
    bt = max(1, batch // n_tc) if n_tc > 1 else batch
    while batch % bt:
        bt -= 1
    return bt


def encoding_model_forward(ids, mask, inputs_embeds, enc_params, *,
                           mode, h_ids=0, t_ids=0,
                           batch_block=None, mlp_block_f=None,
                           vmem_limit_bytes=48 * 1024 * 1024):
    """Synthetic encoder block + pooling, all inside one Pallas kernel.
    Returns (B, D) float32."""
    B, S, D = inputs_embeds.shape
    wq, wk, wv, wo, w1, b1, w2, b2 = enc_params
    F = w1.shape[1]

    Bt = batch_block if batch_block is not None else _default_batch_block(B)
    assert B % Bt == 0, "batch must be divisible by the batch block"
    tf = mlp_block_f if mlp_block_f is not None else min(F, 512)
    assert F % tf == 0, "F must be divisible by the MLP block"

    ids = ids.astype(jnp.int32)
    maskf = mask.astype(jnp.float32)
    scale = 1.0 / jnp.sqrt(jnp.float32(D))
    NEG = jnp.float32(-1e9)
    bf = jnp.bfloat16

    wo_b, w1_b, w2_b = wo.astype(bf), w1.astype(bf), w2.astype(bf)
    b1_f, b2_f = b1.astype(jnp.float32), b2.astype(jnp.float32)

    grid = (B // Bt, F // tf)                            # F (reduction) axis last
    cparams = pltpu.CompilerParams(
        dimension_semantics=("parallel", "arbitrary"),
        vmem_limit_bytes=vmem_limit_bytes)

    x_spec = pl.BlockSpec((Bt, S, D), lambda i, f: (i, 0, 0))
    w1_spec = pl.BlockSpec((D, tf), lambda i, f: (0, f))
    b1_spec = pl.BlockSpec((1, tf), lambda i, f: (0, f))
    w2_spec = pl.BlockSpec((tf, D), lambda i, f: (f, 0))
    b2_spec = pl.BlockSpec((1, D), lambda i, f: (0, 0))
    out_spec = pl.BlockSpec((Bt, 1, D), lambda i, f: (i, 0, 0))

    if mode == "mean":                                   # is_des=True branch
        pos = jnp.arange(S, dtype=jnp.int32)
        causal_bias = jnp.where(pos[:, None] >= pos[None, :], 0.0, NEG)
        causal_bias = causal_bias.reshape(1, S, S).astype(jnp.float32)
        key_bias = ((maskf - 1.0) * 1e9).reshape(B, 1, S)     # 0 valid, -1e9 pad
        wqkv = jnp.concatenate([wq * scale, wk, wv], axis=1).astype(bf)

        kernel = functools.partial(_encoder_mean_pool_kernel,
                                   bt=Bt, seq_len=S, hidden_dim=D)
        out = pl.pallas_call(
            kernel,
            out_shape=jax.ShapeDtypeStruct((B, 1, D), jnp.float32),
            grid_spec=pltpu.PrefetchScalarGridSpec(
                num_scalar_prefetch=0,
                grid=grid,
                in_specs=[
                    pl.BlockSpec((1, S, S), lambda i, f: (0, 0, 0)),   # causal bias
                    pl.BlockSpec((Bt, 1, S), lambda i, f: (i, 0, 0)),  # key-pad bias
                    x_spec,                                            # inputs_embeds
                    pl.BlockSpec((D, 3 * D), lambda i, f: (0, 0)),     # Wqkv
                    pl.BlockSpec((D, D), lambda i, f: (0, 0)),         # Wo
                    w1_spec, b1_spec, w2_spec, b2_spec,
                ],
                out_specs=out_spec,
                scratch_shapes=[pltpu.VMEM((Bt * S, D), jnp.float32),   # h
                                pltpu.VMEM((Bt * S, D), jnp.float32)]), # MLP acc
            compiler_params=cparams,
        )(causal_bias, key_bias, inputs_embeds, wqkv, wo_b, w1_b, b1_f, w2_b, b2_f)
        return out.reshape(B, D)

    # ---- index pooling: "last" (default path) or "marker" -------------------
    if mode == "last":                                   # get_last_token_embedding
        seq_last = jnp.sum(maskf, axis=1).astype(jnp.int32) - 1
        seq_last = jnp.maximum(seq_last, 0)              # all-padding-row safety
        idx = jnp.stack([seq_last, seq_last], axis=1)
    elif mode == "marker":                               # pattern == 'marker'
        pos = jnp.arange(S, dtype=jnp.int32)

        def first_pos(tok):                              # argwhere(...)[0] or 0
            cand = jnp.where(ids == tok, pos[None, :], jnp.int32(S))
            fp = jnp.min(cand, axis=1)
            return jnp.where(fp == S, 0, fp).astype(jnp.int32)

        idx = jnp.stack([first_pos(h_ids), first_pos(t_ids)], axis=1)
    else:
        raise ValueError(f"unknown mode {mode!r}")

    # Host-side gather of the 2 pooled rows (queries + residuals) and the
    # combined additive causal + key-padding bias for those query rows.
    x_pool = inputs_embeds[jnp.arange(B)[:, None], idx]               # (B, 2, D)
    pos_k = jnp.arange(S, dtype=jnp.int32)
    allowed = (pos_k[None, None, :] <= idx[:, :, None]) & (maskf[:, None, :] > 0.5)
    bias = jnp.where(allowed, 0.0, NEG).astype(jnp.float32)           # (B, 2, S)

    wq_s = (wq * scale).astype(bf)
    wkv = jnp.concatenate([wk, wv], axis=1).astype(bf)

    kernel = functools.partial(_encoder_index_pool_kernel,
                               bt=Bt, seq_len=S, hidden_dim=D)
    out = pl.pallas_call(
        kernel,
        out_shape=jax.ShapeDtypeStruct((B, 1, D), jnp.float32),
        grid_spec=pltpu.PrefetchScalarGridSpec(
            num_scalar_prefetch=0,
            grid=grid,
            in_specs=[
                pl.BlockSpec((Bt, 2, S), lambda i, f: (i, 0, 0)),      # query bias
                x_spec,                                                # inputs_embeds
                pl.BlockSpec((Bt, 2, D), lambda i, f: (i, 0, 0)),      # pooled rows
                pl.BlockSpec((D, D), lambda i, f: (0, 0)),             # Wq (scaled)
                pl.BlockSpec((D, 2 * D), lambda i, f: (0, 0)),         # Wk|Wv
                pl.BlockSpec((D, D), lambda i, f: (0, 0)),             # Wo
                w1_spec, b1_spec, w2_spec, b2_spec,
            ],
            out_specs=out_spec,
            scratch_shapes=[pltpu.VMEM((2 * Bt, D), jnp.float32),       # h
                            pltpu.VMEM((2 * Bt, D), jnp.float32)]),     # MLP acc
        compiler_params=cparams,
    )(bias, inputs_embeds, x_pool, wq_s, wkv, wo_b, w1_b, b1_f, w2_b, b2_f)
    return out.reshape(B, D)


# ----------------------------------------------------------------------------
# Plain-JAX glue: embedding_input (soft-prompt replacement) — identical to the
# sequential torch loop (per-row counter p == per-row cumsum of prompt tokens).
# ----------------------------------------------------------------------------
def embedding_input(ids, word_embedding, prompt_embedding,
                    prompt_token_ids, prompt_lens):
    inp = word_embedding[ids]                              # (B, S, D)
    is_p = ids == prompt_token_ids                         # (B, S)
    p_idx = jnp.cumsum(is_p.astype(jnp.int32), axis=1) - 1
    valid = is_p & (p_idx >= 0) & (p_idx < prompt_lens)
    safe = jnp.clip(p_idx, 0, prompt_lens - 1)
    repl = prompt_embedding[safe]                          # (B, S, D)
    return jnp.where(valid[..., None], repl, inp)


# ----------------------------------------------------------------------------
# Pure-JAX reference of the same forward (bf16 MXU inputs, f32 accumulation).
# ----------------------------------------------------------------------------
def reference_forward(ids, mask, x, enc_params, *, mode, h_ids=0, t_ids=0):
    wq, wk, wv, wo, w1, b1, w2, b2 = enc_params
    B, S, D = x.shape
    bf = jnp.bfloat16
    wq, wk, wv, wo, w1, w2 = (w.astype(bf) for w in (wq, wk, wv, wo, w1, w2))
    xb = x.astype(bf)
    q = jnp.einsum('bsd,de->bse', xb, wq, preferred_element_type=jnp.float32)
    k = jnp.einsum('bsd,de->bse', xb, wk, preferred_element_type=jnp.float32)
    v = jnp.einsum('bsd,de->bse', xb, wv, preferred_element_type=jnp.float32)
    scores = jnp.einsum('bqd,bkd->bqk', q.astype(bf), k.astype(bf),
                        preferred_element_type=jnp.float32)
    scores = scores * (1.0 / jnp.sqrt(jnp.float32(D)))
    causal = jnp.tril(jnp.ones((S, S), dtype=bool))[None]
    key_ok = (mask.astype(jnp.float32) > 0.5)[:, None, :]
    scores = jnp.where(causal & key_ok, scores, -1e9)
    p = jax.nn.softmax(scores, axis=-1)
    ctx = jnp.einsum('bqk,bkd->bqd', p.astype(bf), v.astype(bf),
                     preferred_element_type=jnp.float32)
    attn = jnp.einsum('bsd,de->bse', ctx.astype(bf), wo,
                      preferred_element_type=jnp.float32)
    h = x + attn
    ff = jnp.einsum('bsd,df->bsf', h.astype(bf), w1,
                    preferred_element_type=jnp.float32) + b1
    ff = jax.nn.gelu(ff)
    ff = jnp.einsum('bsf,fd->bsd', ff.astype(bf), w2,
                    preferred_element_type=jnp.float32) + b2
    hidden = h + ff
    if mode == "mean":
        return hidden.mean(axis=1)
    if mode == "last":
        L = jnp.maximum(mask.astype(jnp.int32).sum(axis=1) - 1, 0)
        return hidden[jnp.arange(B), L]
    # marker
    pos = jnp.arange(S)

    def first_pos(tok):
        cand = jnp.where(ids == tok, pos[None, :], S)
        fp = cand.min(axis=1)
        return jnp.where(fp == S, 0, fp)

    hp, tp = first_pos(h_ids), first_pos(t_ids)
    return (hidden[jnp.arange(B), hp] + hidden[jnp.arange(B), tp]) / 2.0


# ----------------------------------------------------------------------------
if __name__ == "__main__":
    # config-equivalent constants (small synthetic shapes, TPU-friendly D/F)
    B, S, D, F, VOCAB = 4, 8, 128, 256, 64
    prompt_len, prompt_num = 2, 2
    prompt_lens = prompt_len * prompt_num
    prompt_token_ids, h_token, t_token = 1, 3, 4

    key = jax.random.PRNGKey(0)
    ks = jax.random.split(key, 12)

    # deterministic "checkpoint": word embeddings, soft-prompt table, encoder block
    # TODO(synk): pretrained Qwen weights / multi-layer RoPE stack not reproducible
    # in-script; a single synthetic causal transformer block stands in for it.
    word_embedding = 0.02 * jax.random.normal(ks[0], (VOCAB, D), jnp.float32)
    softprompt_weight = 0.02 * jax.random.normal(ks[1], (prompt_lens, D), jnp.float32)
    scale = 1.0 / jnp.sqrt(jnp.float32(D))
    wq = scale * jax.random.normal(ks[2], (D, D), jnp.float32)
    wk = scale * jax.random.normal(ks[3], (D, D), jnp.float32)
    wv = scale * jax.random.normal(ks[4], (D, D), jnp.float32)
    wo = scale * jax.random.normal(ks[5], (D, D), jnp.float32)
    w1 = scale * jax.random.normal(ks[6], (D, F), jnp.float32)
    b1 = jnp.zeros((1, F), jnp.float32)
    w2 = (1.0 / jnp.sqrt(jnp.float32(F))) * jax.random.normal(ks[7], (F, D), jnp.float32)
    b2 = jnp.zeros((1, D), jnp.float32)
    enc_params = (wq, wk, wv, wo, w1, b1, w2, b2)
    # info_nce_fc params exist in __init__ but are unused in forward()
    _info_nce_w = scale * jax.random.normal(ks[8], (D, D), jnp.float32)
    _info_nce_b = jnp.zeros((D,), jnp.float32)

    # synthetic inputs: ids in [5, VOCAB), prompt / head / tail markers, padded mask
    ids = jax.random.randint(ks[9], (B, S), 5, VOCAB, dtype=jnp.int32)
    ids = ids.at[:, 0].set(prompt_token_ids)   # soft-prompt slot
    ids = ids.at[:, 1].set(prompt_token_ids)   # soft-prompt slot
    ids = ids.at[:, 2].set(h_token)            # head-entity marker
    ids = ids.at[:, 4].set(t_token)            # tail-entity marker
    mask = jnp.array([[1, 1, 1, 1, 1, 1, 0, 0],
                      [1, 1, 1, 1, 1, 1, 1, 1],
                      [1, 1, 1, 1, 1, 0, 0, 0],
                      [1, 1, 1, 1, 1, 1, 1, 0]], jnp.float32)

    # pattern in {'softprompt','hybridprompt'} -> soft-prompt token replacement
    embeds_soft = embedding_input(ids, word_embedding, softprompt_weight,
                                  prompt_token_ids, prompt_lens)
    # pattern == 'marker' -> plain token embeddings
    embeds_plain = word_embedding[ids]

    cases = [
        ("last", embeds_soft),     # default forward (is_des=False)
        ("mean", embeds_soft),     # is_des=True
        ("marker", embeds_plain),  # pattern == 'marker'
    ]
    for mode, embeds in cases:
        out = encoding_model_forward(ids, mask, embeds, enc_params,
                                     mode=mode, h_ids=h_token, t_ids=t_token,
                                     mlp_block_f=128)     # 2 F-steps: exercises
        out = jax.block_until_ready(out)                  # the MLP accumulator
        ref = reference_forward(ids, mask, embeds, enc_params,
                                mode=mode, h_ids=h_token, t_ids=t_token)
        assert out.shape == (B, D)
        assert jnp.allclose(out, ref, rtol=2e-3, atol=2e-3), f"mismatch in mode={mode}"

    # extra coverage: batch-tiled grid (2 parallel steps, v7x-style) + single F step
    out = encoding_model_forward(ids, mask, embeds_soft, enc_params,
                                 mode="last", h_ids=h_token, t_ids=t_token,
                                 batch_block=2, mlp_block_f=256)
    out = jax.block_until_ready(out)
    ref = reference_forward(ids, mask, embeds_soft, enc_params,
                            mode="last", h_ids=h_token, t_ids=t_token)
    assert jnp.allclose(out, ref, rtol=2e-3, atol=2e-3), "mismatch in batch-tiled run"

    print("KERNEL_OK")
</pallas_src>

<mosaic_0001>
module attributes {stable_mosaic.version = 11 : i64} {
  func.func @_encoder_index_pool_kernel(%arg0: i32, %arg1: i32, %arg2: memref<4x2x8xf32, #tpu.memory_space<vmem>>, %arg3: memref<4x8x128xf32, #tpu.memory_space<vmem>>, %arg4: memref<4x2x128xf32, #tpu.memory_space<vmem>>, %arg5: memref<128x128xbf16, #tpu.memory_space<vmem>>, %arg6: memref<128x256xbf16, #tpu.memory_space<vmem>>, %arg7: memref<128x128xbf16, #tpu.memory_space<vmem>>, %arg8: memref<128x128xbf16, #tpu.memory_space<vmem>>, %arg9: memref<1x128xf32, #tpu.memory_space<vmem>>, %arg10: memref<128x128xbf16, #tpu.memory_space<vmem>>, %arg11: memref<1x128xf32, #tpu.memory_space<vmem>>, %arg12: memref<4x1x128xf32, #tpu.memory_space<vmem>>, %arg13: memref<8x128xf32, #tpu.memory_space<vmem>>, %arg14: memref<8x128xf32, #tpu.memory_space<vmem>>) attributes {dimension_semantics = [#tpu.dimension_semantics<parallel>, #tpu.dimension_semantics<arbitrary>], iteration_bounds = array<i64: 1, 2>, scalar_prefetch = 0 : i64, scratch_operands = 2 : i64, tpu.core_type = #tpu.core_type<tc>, window_params = [{transform_indices = @transform_0, window_bounds = array<i64: 4, 2, 8>}, {transform_indices = @transform_1, window_bounds = array<i64: 4, 8, 128>}, {transform_indices = @transform_2, window_bounds = array<i64: 4, 2, 128>}, {pipeline_mode = #tpu.pipeline_mode<synchronous>, transform_indices = @transform_3, window_bounds = array<i64: 128, 128>}, {pipeline_mode = #tpu.pipeline_mode<synchronous>, transform_indices = @transform_4, window_bounds = array<i64: 128, 256>}, {pipeline_mode = #tpu.pipeline_mode<synchronous>, transform_indices = @transform_5, window_bounds = array<i64: 128, 128>}, {transform_indices = @transform_6, window_bounds = array<i64: 128, 128>}, {transform_indices = @transform_7, window_bounds = array<i64: 1, 128>}, {transform_indices = @transform_8, window_bounds = array<i64: 128, 128>}, {pipeline_mode = #tpu.pipeline_mode<synchronous>, transform_indices = @transform_9, window_bounds = array<i64: 1, 128>}, {transform_indices = @transform_10, window_bounds = array<i64: 4, 1, 128>}]} {
    %c0_i32 = arith.constant 0 : i32
    %0 = arith.cmpi eq, %arg1, %c0_i32 : i32
    %1 = arith.extui %0 : i1 to i32
    %c0_i32_0 = arith.constant 0 : i32
    %2 = arith.cmpi ne, %1, %c0_i32_0 : i32
    scf.if %2 {
      %c0_18 = arith.constant 0 : index
      %c0_19 = arith.constant 0 : index
      %c0_20 = arith.constant 0 : index
      %32 = vector.load %arg3[%c0_18, %c0_19, %c0_20] : memref<4x8x128xf32, #tpu.memory_space<vmem>>, vector<4x8x128xf32>
      %33 = vector.shape_cast %32 : vector<4x8x128xf32> to vector<32x128xf32>
      %34 = arith.truncf %33 : vector<32x128xf32> to vector<32x128xbf16>
      %c0_21 = arith.constant 0 : index
      %c0_22 = arith.constant 0 : index
      %c0_23 = arith.constant 0 : index
      %35 = vector.load %arg4[%c0_21, %c0_22, %c0_23] : memref<4x2x128xf32, #tpu.memory_space<vmem>>, vector<4x2x128xf32>
      %36 = vector.shape_cast %35 : vector<4x2x128xf32> to vector<8x128xf32>
      %c0_24 = arith.constant 0 : index
      %c0_25 = arith.constant 0 : index
      %37 = vector.load %arg6[%c0_24, %c0_25] : memref<128x256xbf16, #tpu.memory_space<vmem>>, vector<128x256xbf16>
      %cst_26 = arith.constant dense<0.000000e+00> : vector<32x256xf32>
      %38 = tpu.matmul %34, %37, %cst_26 {dimension_numbers = #tpu.dot_dimension_numbers<[1], [0], [0], [1], [0, 0, 1, 1], [], []>} : vector<32x128xbf16>, vector<128x256xbf16>, vector<32x256xf32> -> vector<32x256xf32>
      %39 = vector.extract_strided_slice %38 {offsets = [0, 0], sizes = [32, 128], strides = [1, 1]} : vector<32x256xf32> to vector<32x128xf32>
      %40 = vector.shape_cast %39 : vector<32x128xf32> to vector<4x8x128xf32>
      %41 = arith.truncf %40 : vector<4x8x128xf32> to vector<4x8x128xbf16>
      %42 = vector.extract_strided_slice %38 {offsets = [0, 128], sizes = [32, 128], strides = [1, 1]} : vector<32x256xf32> to vector<32x128xf32>
      %43 = vector.shape_cast %42 : vector<32x128xf32> to vector<4x8x128xf32>
      %44 = arith.truncf %43 : vector<4x8x128xf32> to vector<4x8x128xbf16>
      %45 = arith.truncf %36 : vector<8x128xf32> to vector<8x128xbf16>
      %c0_27 = arith.constant 0 : index
      %c0_28 = arith.constant 0 : index
      %46 = vector.load %arg5[%c0_27, %c0_28] : memref<128x128xbf16, #tpu.memory_space<vmem>>, vector<128x128xbf16>
      %cst_29 = arith.constant dense<0.000000e+00> : vector<8x128xf32>
      %47 = tpu.matmul %45, %46, %cst_29 {dimension_numbers = #tpu.dot_dimension_numbers<[1], [0], [0], [1], [0, 0, 1, 1], [], []>} : vector<8x128xbf16>, vector<128x128xbf16>, vector<8x128xf32> -> vector<8x128xf32>
      %48 = vector.shape_cast %47 : vector<8x128xf32> to vector<4x2x128xf32>
      %49 = arith.truncf %48 : vector<4x2x128xf32> to vector<4x2x128xbf16>
      %c0_30 = arith.constant 0 : index
      %c0_31 = arith.constant 0 : index
      %c0_32 = arith.constant 0 : index
      %50 = vector.load %arg2[%c0_30, %c0_31, %c0_32] : memref<4x2x8xf32, #tpu.memory_space<vmem>>, vector<4x2x8xf32>
      "tpu.trace_start"() <{level = 10 : i32, message = "bqd,bkd->bqk"}> : () -> ()
      %cst_33 = arith.constant dense<0.000000e+00> : vector<4x2x8xf32>
      %51 = tpu.matmul %49, %41, %cst_33 {dimension_numbers = #tpu.dot_dimension_numbers<[2], [2], [1], [1], [0, 0, 0, 1, 1, 1], [0], [0]>} : vector<4x2x128xbf16>, vector<4x8x128xbf16>, vector<4x2x8xf32> -> vector<4x2x8xf32>
      "tpu.trace_stop"() : () -> ()
      %52 = arith.addf %51, %50 : vector<4x2x8xf32>
      %cst_34 = arith.constant dense<0xFF800000> : vector<4x2xf32>
      %53 = vector.multi_reduction <maximumf>, %52, %cst_34 [2] : vector<4x2x8xf32> to vector<4x2xf32>
      %54 = vector.shape_cast %53 : vector<4x2xf32> to vector<4x2x1xf32>
      %55 = vector.broadcast %54 : vector<4x2x1xf32> to vector<4x2x8xf32>
      %56 = arith.subf %52, %55 : vector<4x2x8xf32>
      %57 = math.exp %56 : vector<4x2x8xf32>
      %cst_35 = arith.constant dense<0.000000e+00> : vector<4x2xf32>
      %58 = vector.multi_reduction <add>, %57, %cst_35 [2] : vector<4x2x8xf32> to vector<4x2xf32>
      %59 = vector.shape_cast %58 : vector<4x2xf32> to vector<4x2x1xf32>
      %60 = vector.broadcast %59 : vector<4x2x1xf32> to vector<4x2x8xf32>
      %61 = arith.divf %57, %60 : vector<4x2x8xf32>
      %62 = arith.truncf %61 : vector<4x2x8xf32> to vector<4x2x8xbf16>
      "tpu.trace_start"() <{level = 10 : i32, message = "bqk,bkd->bqd"}> : () -> ()
      %cst_36 = arith.constant dense<0.000000e+00> : vector<4x2x128xf32>
      %63 = tpu.matmul %62, %44, %cst_36 {dimension_numbers = #tpu.dot_dimension_numbers<[2], [1], [1], [2], [0, 0, 0, 1, 1, 2], [0], [0]>} : vector<4x2x8xbf16>, vector<4x8x128xbf16>, vector<4x2x128xf32> -> vector<4x2x128xf32>
      "tpu.trace_stop"() : () -> ()
      %64 = vector.shape_cast %63 : vector<4x2x128xf32> to vector<8x128xf32>
      %65 = arith.truncf %64 : vector<8x128xf32> to vector<8x128xbf16>
      %c0_37 = arith.constant 0 : index
      %c0_38 = arith.constant 0 : index
      %66 = vector.load %arg7[%c0_37, %c0_38] : memref<128x128xbf16, #tpu.memory_space<vmem>>, vector<128x128xbf16>
      %cst_39 = arith.constant dense<0.000000e+00> : vector<8x128xf32>
      %67 = tpu.matmul %65, %66, %cst_39 {dimension_numbers = #tpu.dot_dimension_numbers<[1], [0], [0], [1], [0, 0, 1, 1], [], []>} : vector<8x128xbf16>, vector<128x128xbf16>, vector<8x128xf32> -> vector<8x128xf32>
      %68 = arith.addf %36, %67 : vector<8x128xf32>
      %c0_40 = arith.constant 0 : index
      %c0_41 = arith.constant 0 : index
      %69 = vector.load %arg13[%c0_40, %c0_41] : memref<8x128xf32, #tpu.memory_space<vmem>>, vector<8x128xf32>
      tpu.vector_store %arg13[%c0_40, %c0_41], %68 {strides = array<i32>} : memref<8x128xf32, #tpu.memory_space<vmem>>, vector<8x128xf32>,
      %c0_42 = arith.constant 0 : index
      %c0_43 = arith.constant 0 : index
      %70 = vector.load %arg14[%c0_42, %c0_43] : memref<8x128xf32, #tpu.memory_space<vmem>>, vector<8x128xf32>
      tpu.vector_store %arg14[%c0_42, %c0_43], %68 {strides = array<i32>} : memref<8x128xf32, #tpu.memory_space<vmem>>, vector<8x128xf32>,
    } else {
    }
    %c0 = arith.constant 0 : index
    %c0_1 = arith.constant 0 : index
    %3 = vector.load %arg13[%c0, %c0_1] : memref<8x128xf32, #tpu.memory_space<vmem>>, vector<8x128xf32>
    %4 = arith.truncf %3 : vector<8x128xf32> to vector<8x128xbf16>
    %c0_2 = arith.constant 0 : index
    %c0_3 = arith.constant 0 : index
    %5 = vector.load %arg8[%c0_2, %c0_3] : memref<128x128xbf16, #tpu.memory_space<vmem>>, vector<128x128xbf16>
    %cst = arith.constant dense<0.000000e+00> : vector<8x128xf32>
    %6 = tpu.matmul %4, %5, %cst {dimension_numbers = #tpu.dot_dimension_numbers<[1], [0], [0], [1], [0, 0, 1, 1], [], []>} : vector<8x128xbf16>, vector<128x128xbf16>, vector<8x128xf32> -> vector<8x128xf32>
    %c0_4 = arith.constant 0 : index
    %c0_5 = arith.constant 0 : index
    %7 = vector.load %arg9[%c0_4, %c0_5] : memref<1x128xf32, #tpu.memory_space<vmem>>, vector<1x128xf32>
    %8 = vector.broadcast %7 : vector<1x128xf32> to vector<8x128xf32>
    %9 = arith.addf %6, %8 : vector<8x128xf32>
    %10 = arith.mulf %9, %9 : vector<8x128xf32>
    %11 = arith.mulf %9, %10 : vector<8x128xf32>
    %cst_6 = arith.constant 4.471500e-02 : f32
    %12 = vector.broadcast %cst_6 : f32 to vector<8x128xf32>
    %13 = arith.mulf %12, %11 : vector<8x128xf32>
    %14 = arith.addf %9, %13 : vector<8x128xf32>
    %cst_7 = arith.constant 0.797884583 : f32
    %15 = vector.broadcast %cst_7 : f32 to vector<8x128xf32>
    %16 = arith.mulf %15, %14 : vector<8x128xf32>
    %17 = math.tanh %16 : vector<8x128xf32>
    %cst_8 = arith.constant 1.000000e+00 : f32
    %18 = vector.broadcast %cst_8 : f32 to vector<8x128xf32>
    %19 = arith.addf %18, %17 : vector<8x128xf32>
    %cst_9 = arith.constant 5.000000e-01 : f32
    %20 = vector.broadcast %cst_9 : f32 to vector<8x128xf32>
    %21 = arith.mulf %20, %19 : vector<8x128xf32>
    %22 = arith.mulf %9, %21 : vector<8x128xf32>
    %c0_10 = arith.constant 0 : index
    %c0_11 = arith.constant 0 : index
    %23 = vector.load %arg14[%c0_10, %c0_11] : memref<8x128xf32, #tpu.memory_space<vmem>>, vector<8x128xf32>
    %24 = arith.truncf %22 : vector<8x128xf32> to vector<8x128xbf16>
    %c0_12 = arith.constant 0 : index
    %c0_13 = arith.constant 0 : index
    %25 = vector.load %arg10[%c0_12, %c0_13] : memref<128x128xbf16, #tpu.memory_space<vmem>>, vector<128x128xbf16>
    %cst_14 = arith.constant dense<0.000000e+00> : vector<8x128xf32>
    %26 = tpu.matmul %24, %25, %cst_14 {dimension_numbers = #tpu.dot_dimension_numbers<[1], [0], [0], [1], [0, 0, 1, 1], [], []>} : vector<8x128xbf16>, vector<128x128xbf16>, vector<8x128xf32> -> vector<8x128xf32>
    %27 = arith.addf %23, %26 : vector<8x128xf32>
    %c0_15 = arith.constant 0 : index
    %c0_16 = arith.constant 0 : index
    %28 = vector.load %arg14[%c0_15, %c0_16] : memref<8x128xf32, #tpu.memory_space<vmem>>, vector<8x128xf32>
    tpu.vector_store %arg14[%c0_15, %c0_16], %27 {strides = array<i32>} : memref<8x128xf32, #tpu.memory_space<vmem>>, vector<8x128xf32>,
    %c1_i32 = arith.constant 1 : i32
    %29 = arith.cmpi eq, %arg1, %c1_i32 : i32
    %30 = arith.extui %29 : i1 to i32
    %c0_i32_17 = arith.constant 0 : i32
    %31 = arith.cmpi ne, %30, %c0_i32_17 : i32
    scf.if %31 {
      %c0_18 = arith.constant 0 : index
      %c0_19 = arith.constant 0 : index
      %32 = vector.load %arg14[%c0_18, %c0_19] : memref<8x128xf32, #tpu.memory_space<vmem>>, vector<8x128xf32>
      %c0_20 = arith.constant 0 : index
      %c0_21 = arith.constant 0 : index
      %33 = vector.load %arg11[%c0_20, %c0_21] : memref<1x128xf32, #tpu.memory_space<vmem>>, vector<1x128xf32>
      %34 = vector.broadcast %33 : vector<1x128xf32> to vector<8x128xf32>
      %35 = arith.addf %32, %34 : vector<8x128xf32>
      %36 = vector.shape_cast %35 : vector<8x128xf32> to vector<4x2x128xf32>
      %37 = vector.extract_strided_slice %36 {offsets = [0, 0, 0], sizes = [4, 1, 128], strides = [1, 1, 1]} : vector<4x2x128xf32> to vector<4x1x128xf32>
      %38 = vector.extract_strided_slice %36 {offsets = [0, 1, 0], sizes = [4, 1, 128], strides = [1, 1, 1]} : vector<4x2x128xf32> to vector<4x1x128xf32>
      %39 = arith.addf %37, %38 : vector<4x1x128xf32>
      %cst_22 = arith.constant 5.000000e-01 : f32
      %40 = vector.broadcast %cst_22 : f32 to vector<4x1x128xf32>
      %41 = arith.mulf %40, %39 : vector<4x1x128xf32>
      %c0_23 = arith.constant 0 : index
      %c0_24 = arith.constant 0 : index
      %c0_25 = arith.constant 0 : index
      %42 = vector.load %arg12[%c0_23, %c0_24, %c0_25] : memref<4x1x128xf32, #tpu.memory_space<vmem>>, vector<4x1x128xf32>
      tpu.vector_store %arg12[%c0_23, %c0_24, %c0_25], %41 {strides = array<i32>} : memref<4x1x128xf32, #tpu.memory_space<vmem>>, vector<4x1x128xf32>,
    } else {
    }
    return
  }
  func.func @transform_0(%arg0: i32, %arg1: i32) -> (i32, i32, i32) {
    %c0_i32 = arith.constant 0 : i32
    %c0_i32_0 = arith.constant 0 : i32
    %c0_i32_1 = arith.constant 0 : i32
    return %arg0, %c0_i32, %c0_i32_0 : i32, i32, i32
  }
  func.func @transform_1(%arg0: i32, %arg1: i32) -> (i32, i32, i32) {
    %c0_i32 = arith.constant 0 : i32
    %c0_i32_0 = arith.constant 0 : i32
    %c0_i32_1 = arith.constant 0 : i32
    return %arg0, %c0_i32, %c0_i32_0 : i32, i32, i32
  }
  func.func @transform_2(%arg0: i32, %arg1: i32) -> (i32, i32, i32) {
    %c0_i32 = arith.constant 0 : i32
    %c0_i32_0 = arith.constant 0 : i32
    %c0_i32_1 = arith.constant 0 : i32
    return %arg0, %c0_i32, %c0_i32_0 : i32, i32, i32
  }
  func.func @transform_3(%arg0: i32, %arg1: i32) -> (i32, i32) {
    %c0_i32 = arith.constant 0 : i32
    %c0_i32_0 = arith.constant 0 : i32
    %c0_i32_1 = arith.constant 0 : i32
    return %c0_i32, %c0_i32_0 : i32, i32
  }
  func.func @transform_4(%arg0: i32, %arg1: i32) -> (i32, i32) {
    %c0_i32 = arith.constant 0 : i32
    %c0_i32_0 = arith.constant 0 : i32
    %c0_i32_1 = arith.constant 0 : i32
    return %c0_i32, %c0_i32_0 : i32, i32
  }
  func.func @transform_5(%arg0: i32, %arg1: i32) -> (i32, i32) {
    %c0_i32 = arith.constant 0 : i32
    %c0_i32_0 = arith.constant 0 : i32
    %c0_i32_1 = arith.constant 0 : i32
    return %c0_i32, %c0_i32_0 : i32, i32
  }
  func.func @transform_6(%arg0: i32, %arg1: i32) -> (i32, i32) {
    %c0_i32 = arith.constant 0 : i32
    %c0_i32_0 = arith.constant 0 : i32
    return %c0_i32, %arg1 : i32, i32
  }
  func.func @transform_7(%arg0: i32, %arg1: i32) -> (i32, i32) {
    %c0_i32 = arith.constant 0 : i32
    %c0_i32_0 = arith.constant 0 : i32
    return %c0_i32, %arg1 : i32, i32
  }
  func.func @transform_8(%arg0: i32, %arg1: i32) -> (i32, i32) {
    %c0_i32 = arith.constant 0 : i32
    %c0_i32_0 = arith.constant 0 : i32
    return %arg1, %c0_i32 : i32, i32
  }
  func.func @transform_9(%arg0: i32, %arg1: i32) -> (i32, i32) {
    %c0_i32 = arith.constant 0 : i32
    %c0_i32_0 = arith.constant 0 : i32
    %c0_i32_1 = arith.constant 0 : i32
    return %c0_i32, %c0_i32_0 : i32, i32
  }
  func.func @transform_10(%arg0: i32, %arg1: i32) -> (i32, i32, i32) {
    %c0_i32 = arith.constant 0 : i32
    %c0_i32_0 = arith.constant 0 : i32
    %c0_i32_1 = arith.constant 0 : i32
    return %arg0, %c0_i32, %c0_i32_0 : i32, i32, i32
  }
}

</mosaic_0001>

<bundles_post_ra>
// kernel: tpu_custom_call.1
= control target key start
LH: loop header
LB: loop body
LE: loop exit
PB: predicated region body
PF: predicated region fallthrough
CT: control target
= control target key end

     0   :  { %s2700_s0 = inlined_call_operand.hbm [shape: f32[4,2,8], index: 0, kind: input, shape index: {}]   ;;  %s2701_s1 = inlined_call_operand.hbm [shape: f32[4,8,128], index: 1, kind: input, shape index: {}]   ;;  %s2702_s2 = inlined_call_operand.hbm [shape: f32[4,2,128], index: 2, kind: input, shape index: {}]   ;;  %s2703_s3 = inlined_call_operand.hbm [shape: bf16[128,128], index: 3, kind: input, shape index: {}]   ;;  %s2704_s4 = inlined_call_operand.hbm [shape: bf16[128,256], index: 4, kind: input, shape index: {}]   ;;  %s2705_s5 = inlined_call_operand.hbm [shape: bf16[128,128], index: 5, kind: input, shape index: {}]   ;;  %s2706_s6 = inlined_call_operand.hbm [shape: bf16[128,256], index: 6, kind: input, shape index: {}]   ;;  %s2707_s7 = inlined_call_operand.vmem [shape: f32[1,256], index: 7, kind: input, shape index: {}]   ;;  %s2708_s8 = inlined_call_operand.hbm [shape: bf16[256,128], index: 8, kind: input, shape index: {}]   ;;  %s2709_s9 = inlined_call_operand.vmem [shape: f32[1,128], index: 9, kind: input, shape index: {}]   ;;  %s2710_s10 = inlined_call_operand.hbm [shape: f32[4,1,128], index: 10, kind: output, shape index: {}]  }
   0x1   :  { %2723 = sst [smem:[#allocation28_spill]] %s2700_s0 }
   0x2   :  { %2724 = sst [smem:[#allocation29_spill]] %s2701_s1 }
   0x3   :  { %2725 = sst [smem:[#allocation30_spill]] %s2702_s2 }
   0x4   :  { %2726 = sst [smem:[#allocation31_spill]] %s2703_s3 }
   0x5   :  { %2727 = sst [smem:[#allocation32_spill]] %s2704_s4 }
   0x6   :  { %2728 = sst [smem:[#allocation33_spill]] %s2706_s6 }
   0x7   :  { %2729 = sst [smem:[#allocation34_spill]] %s2710_s10 }
   0x8   :  { %15 = vsyncpa [#allocation5], 0 }
   0x9   :  { %16 = vsyncpa [#allocation8], 0 }
   0xa   :  { %17 = vsyncpa [#allocation11], 0 }
   0xb   :  { %18 = vsyncpa [#allocation14], 0 }
   0xc   :  { %19 = vsyncpa [#allocation6], 0  ;;  %s2407_s13 = smov 0   ;;  %s2409_s14 = smov 0  }
   0xd   :  { %s2411_s15 = smov 0   ;;  %s2413_s16 = smov 0  }
   0xe   :  { %s2415_s17 = smov 0   ;;  %s2417_s18 = smov 0  }
   0xf LB: > { %2730 = sst [smem:[#allocation24_spill]] %s2323_s15  ;;  %s2438_s19 = sadd.s32 4294967295, %s2335_s18   ;;  %s2335_s18 = sphi %s2417_s18, %s25_s18   ;;  %s2331_s17 = sphi %s2415_s17, %s2759_s17   ;;  %s2327_s16 = sphi %s2413_s16, %s2758_s16   ;;  %s2323_s15 = sphi %s2411_s15, %s2754_s15   ;;  %s2319_s14 = sphi %s2409_s14, %s2757_s14   ;;  %s2315_s13 = sphi %s2407_s13, %s2756_s13  }
  0x10   : > { %2731 = sst [smem:[#allocation25_spill]] %s2335_s18  ;;  %p1564_p0 = scmp.ge.s32.totalorder %s2335_s18, 1 }
  0x11   : > { %p199_p1 = scmp.eq.s32.totalorder %s2438_s19, 0  ;;  %p308_p2 = scmp.lt.s32.totalorder %s2335_s18, 3 }
  0x12   : > { %s2732_s0 = sld [smem:[#allocation28_spill]]  ;;  %s2337_s24 = smov [#allocation4]  }
  0x13   : > { %p2446_p3 = pnand %p1564_p0, %p308_p2  ;;  %s324_s25 = sshll.u32 %s2337_s24, 4  ;;  %s325_s25 = int_to_ptr.vmem [resolvable:$true] %s324_s25 }
  0x14   : > { %s2735_s1 = sld [smem:[#allocation29_spill]]  ;;  %s2711_s30 = smov 32  }
  0x15   : > { %p1873_p4 = pneg %p2446_p3  ;;  %s2712_s11 = smov 2  }
  0x16   : > { %s2340_s12 = smov [#allocation7]   ;;  %s2714_s21 = smov 128  }
  0x17   : > { %p2454_p5 = pnand %p1873_p4, %p199_p1  ;;  %s341_s20 = sshll.u32 %s2340_s12, 4  ;;  %s342_s20 = int_to_ptr.vmem [resolvable:$true] %s341_s20 }
  0x18   : > { %s322_s22 = sshll.u32 %s2732_s0, 4  ;;  %s2713_s24 = smov 8   ;;  %s323_s22 = int_to_ptr.hbm [resolvable:$true] %s322_s22 }
  0x19   : > { %1876 = dma.hbm_to_vmem [thread:$0]  (!%p2454_p5), %s323_s22, 128, %s325_s25, [#allocation5], %s2711_s30, %s2711_s30, %s2712_s11  }
  0x1a   : > { %s339_s29 = sshll.u32 %s2735_s1, 4  ;;  %s2736_s3 = sld [smem:[#allocation31_spill]]  ;;  %s340_s29 = int_to_ptr.hbm [resolvable:$true] %s339_s29 }
  0x1b   : > { %1879 = dma.hbm_to_vmem [thread:$0]  (!%p2454_p5), %s340_s29, 512, %s342_s20, [#allocation8], %s2714_s21, %s2714_s21, %s2713_s24  }
  0x1c   : > { %s2343_s25 = smov [#allocation10]   ;;  %s2716_s30 = smov 64  }
  0x1d   : > { %s372_s12 = sshll.u32 %s2343_s25, 4  ;;  %s2718_s11 = smov 4   ;;  %s373_s12 = int_to_ptr.vmem [resolvable:$true] %s372_s12 }
  0x1e   : > { %s34_s29 = sadd.s32 1, %s2331_s17  ;;  %s185_s20 = sadd.s32 1, %s2323_s15 }
  0x1f   : > { %p35_p6 = scmp.ge.s32.totalorder %s34_s29, 2  ;;  %p192_p7 = scmp.ne.s32.totalorder %s2323_s15, %s2319_s14 }
  0x20   : > { %s370_s22 = sshll.u32 %s2736_s3, 4  ;;  %p193_p8 = scmp.eq.s32.totalorder %s2335_s18, 0  ;;  %s371_s22 = int_to_ptr.hbm [resolvable:$true] %s370_s22 }
  0x21   : > { %1885 = dma.hbm_to_vmem [thread:$0]  (!%p2454_p5), %s371_s22, 1024, %s373_s12, [#allocation11], %s2716_s30, %s2716_s30, %s2718_s11  }
  0x22   : > { %s2761_s29 = smov (%p35_p6, %s34_s29), 0  ;;  %p2486_p9 = por %p193_p8, %p192_p7 }
  0x23   : > { %2737 = sst [smem:[#allocation26_spill]] %s2761_s29  ;;  %p198_p10 = scmp.ne.s32.totalorder %s2319_s14, %s2315_s13 }
  0x24   : > { %s182_s28 = ssub.s32 %s2331_s17, %s2761_s29  ;;  %p1905_p11 = scmp.lt.s32.totalorder %s2335_s18, 2 }
  0x25   : > { %p183_p12 = scmp.eq.s32.totalorder %s182_s28, 0  ;;  %p2497_p13 = por %p199_p1, %p198_p10 }
  0x26   : > { %s417_s25 = sand.u32 1, %s2335_s18   ;;  %s419_s12 = sand.u32 1, %s2323_s15  }
  0x27   : > { %s2504_s24 = scalar_select %p183_p12, %s2323_s15, %s185_s20  }
  0x28   : > { %s2506_s21 = sshll.u32 %s419_s12, 6  ;;  %s1573_s30 = sshll.u32 %s2331_s17, 2 }
  0x29   : > { %2740 = sst [smem:[#allocation27_spill]] %s2504_s24  ;;  %s421_s1 = scalar_lea.vmem [#allocation15], %s2506_s21 }
  0x2a   : > { %s2741_s6 = sld [smem:[#allocation33_spill]]  ;;  %s428_s28 = sshll.u32 %s421_s1, 4  ;;  %s429_s28 = int_to_ptr.vmem [resolvable:$true] %s428_s28 }
  0x2b   : > { %p2517_p0 = pnand %p1905_p11, %p2486_p9  ;;  %s2743_s2 = sld [smem:[#allocation30_spill]] }
  0x2c   : > { %s2744_s1 = smov 4   ;;  %s2746_s11 = smov 128  }
  0x2d   : > { %s2346_s27 = smov [#allocation9]   ;;  %s2747_s4 = sld [smem:[#allocation32_spill]] }
  0x2e   : > { %s358_s13 = sshll.u32 %s2346_s27, 4  ;;  %s2749_s12 = smov 32   ;;  %s359_s13 = int_to_ptr.vmem [resolvable:$true] %s358_s13 }
  0x2f   : > { %s2348_s15 = smov [#allocation13]   ;;  %s1792_s10 = sshll.u32 %s2331_s17, 6 }
  0x30   : > { %s425_s0 = scalar_lea.hbm %s2741_s6, %s1573_s30  ;;  %s2524_s30 = scalar_lea.sflag [#allocation5], %s417_s25 }
  0x31   : > { %s426_s3 = sshll.u32 %s425_s0, 4  ;;  %s356_s24 = sshll.u32 %s2743_s2, 4  ;;  %s427_s3 = int_to_ptr.hbm [resolvable:$true] %s426_s3  ;;  %s357_s24 = int_to_ptr.hbm [resolvable:$true] %s356_s24 }
  0x32   : > { %s2745_s0 = smov 64   ;;  %s2748_s25 = smov 2  }
  0x33   : > { %1895 = dma.hbm_to_vmem [thread:$0]  (!%p2517_p0), %s427_s3, 1024, %s429_s28, %s2524_s30, %s2746_s11, %s2745_s0, %s2744_s1  }
  0x34   : > { %s384_s20 = sshll.u32 %s2747_s4, 4  ;;  %s398_s3 = sshll.u32 %s2705_s5, 4  ;;  %s385_s20 = int_to_ptr.hbm [resolvable:$true] %s384_s20  ;;  %s399_s3 = int_to_ptr.hbm [resolvable:$true] %s398_s3 }
  0x35   : > { %1882 = dma.hbm_to_vmem [thread:$0]  (!%p2454_p5), %s357_s24, 128, %s359_s13, [#allocation8], %s2749_s12, %s2749_s12, %s2748_s25  }
  0x36   : > { %s2347_s28 = smov [#allocation12]   ;;  %s2750_s6 = smov 8  }
  0x37   : > { %s386_s27 = sshll.u32 %s2347_s28, 4  ;;  %s400_s4 = sshll.u32 %s2348_s15, 4  ;;  %s387_s27 = int_to_ptr.vmem [resolvable:$true] %s386_s27  ;;  %s401_s4 = int_to_ptr.vmem [resolvable:$true] %s400_s4 }
  0x38   : > { %1888 = dma.hbm_to_vmem [thread:$0]  (!%p2454_p5), %s385_s20, 2048, %s387_s27, [#allocation11], %s2746_s11, %s2746_s11, %s2750_s6  }
  0x39   : > { %1891 = dma.hbm_to_vmem [thread:$0]  (!%p2454_p5), %s399_s3, 1024, %s401_s4, [#allocation14], %s2745_s0, %s2745_s0, %s2744_s1  }
  0x3a   : > { %s453_s24 = scalar_lea.hbm %s2708_s8, %s1792_s10  ;;  %s448_s13 = scalar_lea.vmem [#allocation16], %s2506_s21 }
  0x3b   : > { %s456_s25 = sshll.u32 %s448_s13, 4  ;;  %s454_s12 = sshll.u32 %s453_s24, 4  ;;  %s457_s25 = int_to_ptr.vmem [resolvable:$true] %s456_s25  ;;  %s455_s12 = int_to_ptr.hbm [resolvable:$true] %s454_s12 }
  0x3c   : > { %1898 = dma.hbm_to_vmem [thread:$0]  (!%p2517_p0), %s455_s12, 1024, %s457_s25, %s2524_s30, %s2745_s0, %s2745_s0, %s2744_s1  }
  0x3d   : > { %468 = sbr.rel (%p2446_p3) target bundleno = 1324 (0x52c), region = 60 }
  0x42   : > { %2290 = dma.done.wait (%p199_p1), [#allocation5], 128  }
  0x43   : > { %2292 = vsyncadd (%p199_p1), [#allocation5], 4294967168 }
  0x44   : > { %2294 = dma.done.wait (%p199_p1), [#allocation8], 640  }
  0x45   : > { %2296 = vsyncadd (%p199_p1), [#allocation8], 4294966656 }
  0x46   : > { %2298 = dma.done.wait (%p199_p1), [#allocation11], 3072  }
  0x47   : > { %2300 = vsyncadd (%p199_p1), [#allocation11], 4294964224 }
  0x48   : > { %2302 = dma.done.wait (%p199_p1), [#allocation14], 1024  }
  0x49   : > { %2304 = vsyncadd (%p199_p1), [#allocation14], 4294966272  ;;  %s500_s4 = sand.u32 1, %s2438_s19   ;;  %s502_s10 = sand.u32 1, %s2319_s14  }
  0x4a   : > { %s1584_s23 = sshll.u32 %s502_s10, 6  ;;  %s501_s26 = scalar_lea.sflag [#allocation5], %s500_s4 }
  0x4b   : > { %s2584_s21 = scalar_lea.vmem [#allocation15], %s1584_s23 }
  0x4c   : > { %2306 = dma.done.wait (%p2497_p13), %s501_s26, 2048  }
  0x4d   : > { %2308 = vsyncadd (%p2497_p13), %s501_s26, 4294965248  ;;  %p558_p2 = scmp.lt.s32.totalorder %s2327_s16, 1  ;;  %s2598_s11 = scalar_lea.vmem [#allocation16], %s1584_s23 }
  0x4e   : > { %p1586_p1 = scmp.ne.s32.totalorder %s2327_s16, 0 }
  0x4f   : > { %s2592_s29 = scalar_select %p558_p2, %s2327_s16, 1 }
  0x50   : > { %567 = sbr.rel (%p1586_p1) target bundleno = 980 (0x3d4), region = 96 }
  0x51   : > { %s560_s0 = scalar_lea.vmem %s2707_s7, %s2592_s29 }
  0x55   : > { %v1645_v0 = vld [vmem:[#allocation12 + $0x70] sm:$0xf]  ;;  %v1808_v1 = vld [vmem:[#allocation12 + $0x74] sm:$0xf0]  ;;  %v1637_v4 = vld [vmem:[#allocation12 + $0x60] sm:$0xf] }
  0x56   : > { %v1816_v2 = vld [vmem:[#allocation10 + $0x38] sm:$0xff]  ;;  %v1646_v3 = vor.u32 %v1808_v1, %v1645_v0  ;;  %v1806_v5 = vld [vmem:[#allocation12 + $0x64] sm:$0xf0]  ;;  %v1815_v6 = vld [vmem:[#allocation10 + $0x30] sm:$0xff]  ;;  %vm878_vm0 = vcmask 58368   ;;  %vm983_vm1 = vcmask 1043456  }
  0x57   : > { %798 = vmatpush.bf16.msra.mxu2 %v1816_v2  ;;  %v1638_v7 = vor.u32 %v1806_v5, %v1637_v4  ;;  %v1629_v8 = vld [vmem:[#allocation12 + $0x50] sm:$0xf]  ;;  %v1804_v9 = vld [vmem:[#allocation12 + $0x54] sm:$0xf0]  ;;  %v1814_v10 = vld [vmem:[#allocation10 + $0x28] sm:$0xff]  ;;  %vm979_vm6 = vcmask 64512  }
  0x58   : > { %674 = vmatpush.bf16.msra.mxu0 %v1646_v3  ;;  %v1630_v11 = vor.u32 %v1804_v9, %v1629_v8  ;;  %v1621_v12 = vld [vmem:[#allocation12 + $0x40] sm:$0xf]  ;;  %v1802_v13 = vld [vmem:[#allocation12 + $0x44] sm:$0xf0]  ;;  %v2601_v14 = vld [vmem:[#allocation9] sm:$0x3] }
  0x59   : > { %v2603_v15 = vld [vmem:[#allocation9 + $0x2] sm:$0x3]  ;;  %v2605_v16 = vld [vmem:[#allocation9 + $0x4] sm:$0x3]  ;;  %v1813_v17 = vld [vmem:[#allocation10 + $0x20] sm:$0xff]  ;;  %v1622_v19 = vor.u32 %v1802_v13, %v1621_v12 }
  0x5a   : > { %v2607_v18 = vld [vmem:[#allocation9 + $0x6] sm:$0x3]  ;;  %724 = vst [vmem:[#allocation1] ss:$4 sm:$0xff] %v2601_v14  ;;  %v1613_v20 = vld [vmem:[#allocation12 + $0x30] sm:$0xf] }
  0x5b   : > { %799 = vmatpush.bf16.msra.mxu2 %v1815_v6  ;;  %726 = vst [vmem:[#allocation1 + $0x1] ss:$4 sm:$0xff] %v2603_v15  ;;  %v1800_v21 = vld [vmem:[#allocation12 + $0x34] sm:$0xf0]  ;;  %v1605_v24 = vld [vmem:[#allocation12 + $0x20] sm:$0xf] }
  0x5c   : > { %675 = vmatpush.bf16.msra.mxu0 %v1638_v7  ;;  %728 = vst [vmem:[#allocation1 + $0x2] ss:$4 sm:$0xff] %v2605_v16  ;;  %v1812_v22 = vld [vmem:[#allocation10 + $0x18] sm:$0xff]  ;;  %v1614_v23 = vor.u32 %v1800_v21, %v1613_v20  ;;  %v1798_v25 = vld [vmem:[#allocation12 + $0x24] sm:$0xf0]  ;;  %v1811_v26 = vld [vmem:[#allocation10 + $0x10] sm:$0xff] }
  0x5d   : > { %730 = vst [vmem:[#allocation1 + $0x3] ss:$4 sm:$0xff] %v2607_v18  ;;  %v1606_v27 = vor.u32 %v1798_v25, %v1605_v24  ;;  %v1597_v28 = vld [vmem:[#allocation12 + $0x10] sm:$0xf]  ;;  %v1796_v29 = vld [vmem:[#allocation12 + $0x14] sm:$0xf0] }
  0x5e   : > { %v1810_v30 = vld [vmem:[#allocation10 + $0x8] sm:$0xff]  ;;  %v1598_v31 = vor.u32 %v1796_v29, %v1597_v28  ;;  %v1589_v32 = vld [vmem:[#allocation12] sm:$0xf]  ;;  %v568_v37 = vld [vmem:[#allocation7] sm:$0xff] }
  0x5f   : > { %800 = vmatpush.bf16.msra.mxu2 %v1814_v10  ;;  %v1794_v33 = vld [vmem:[#allocation12 + $0x4] sm:$0xf0]  ;;  %v1809_v34 = vld [vmem:[#allocation10] sm:$0xff]  ;;  %v571_v42 = vld [vmem:[#allocation7 + $0x18] sm:$0xff] }
  0x60   : > { %676 = vmatpush.bf16.msra.mxu0 %v1630_v11  ;;  %v1590_v36 = vor.u32 %v1794_v33, %v1589_v32  ;;  %v569_v38 = vld [vmem:[#allocation7 + $0x8] sm:$0xff]  ;;  %v570_v41 = vld [vmem:[#allocation7 + $0x10] sm:$0xff]  ;;  %v822_v61 = vld [vmem:[#allocation4] sm:$0x3] }
  0x61   : > { %v2613_v40 = vpack.c.bf16 %v569_v38, %v568_v37  ;;  %v2616_v43 = vpack.c.bf16 %v571_v42, %v570_v41  ;;  %v1807_v1 = vld [vmem:[#allocation12 + $0x74] sm:$0xf]  ;;  %v1647_v2 = vld [vmem:[#allocation12 + $0x78] sm:$0xf0]  ;;  %v1805_v3 = vld [vmem:[#allocation12 + $0x64] sm:$0xf] }
  0x62   : > { %v1650_v4 = vor.u32 %v1807_v1, %v1647_v2  ;;  %v1639_v5 = vld [vmem:[#allocation12 + $0x68] sm:$0xf0]  ;;  %v1803_v8 = vld [vmem:[#allocation12 + $0x54] sm:$0xf]  ;;  %v1631_v9 = vld [vmem:[#allocation12 + $0x58] sm:$0xf0] }
  0x63   : > { %801 = vmatpush.bf16.msra.mxu2 %v1813_v17  ;;  %v1642_v7 = vor.u32 %v1805_v3, %v1639_v5  ;;  %v823_v10 = vld [vmem:[#allocation4 + $0x2] sm:$0x3]  ;;  %v1634_v11 = vor.u32 %v1803_v8, %v1631_v9  ;;  %v1801_v13 = vld [vmem:[#allocation12 + $0x44] sm:$0xf]  ;;  %v1623_v17 = vld [vmem:[#allocation12 + $0x48] sm:$0xf0] }
  0x64   : > { %677 = vmatpush.bf16.msra.mxu0 %v1622_v19  ;;  %v731_v35 = vld.sshfl [vmem:[#allocation1] sm:$0xff pattern:$0x73625140]  ;;  %693 = vmatpush.bf16.msra.mxu1 %v1650_v4  ;;  %v1626_v21 = vor.u32 %v1801_v13, %v1623_v17  ;;  %v824_v29 = vld [vmem:[#allocation4 + $0x4] sm:$0x3] }
  0x65   : > { %v733_v39 = vpack.c.bf16 %v731_v35, %v731_v35  ;;  %v1599_v41 = vld [vmem:[#allocation12 + $0x18] sm:$0xf0]  ;;  %v1793_v42 = vld [vmem:[#allocation12 + $0x4] sm:$0xf] }
  0x67   : > { %802 = vmatpush.bf16.msra.mxu2 %v1812_v22  ;;  %v1799_v22 = vld [vmem:[#allocation12 + $0x34] sm:$0xf] }
  0x68   : > { %678 = vmatpush.bf16.msra.mxu0 %v1614_v23  ;;  %694 = vmatpush.bf16.msra.mxu1 %v1642_v7  ;;  %v1615_v23 = vld [vmem:[#allocation12 + $0x38] sm:$0xf0] }
  0x69   : > { %v1618_v24 = vor.u32 %v1799_v22, %v1615_v23 }
  0x6b   : > { %803 = vmatpush.bf16.msra.mxu2 %v1811_v26  ;;  %v1797_v26 = vld [vmem:[#allocation12 + $0x24] sm:$0xf] }
  0x6c   : > { %679 = vmatpush.bf16.msra.mxu0 %v1606_v27  ;;  %695 = vmatpush.bf16.msra.mxu1 %v1634_v11  ;;  %v1607_v27 = vld [vmem:[#allocation12 + $0x28] sm:$0xf0] }
  0x6d   : > { %v1610_v28 = vor.u32 %v1797_v26, %v1607_v27 }
  0x6f   : > { %804 = vmatpush.bf16.msra.mxu2 %v1810_v30  ;;  %v825_v30 = vld [vmem:[#allocation4 + $0x6] sm:$0x3] }
  0x70   : > { %680 = vmatpush.bf16.msra.mxu0 %v1598_v31  ;;  %696 = vmatpush.bf16.msra.mxu1 %v1626_v21 }
  0x73   : > { %805 = vmatpush.bf16.msra.mxu2 %v1809_v34 }
  0x74   : > { %681 = vmatpush.bf16.msra.mxu0 %v1590_v36  ;;  %697 = vmatpush.bf16.msra.mxu1 %v1618_v24 }
  0x76   : > { %806 = vmatmul.bf16.vlgmr.msra.gmra.mxu2 %v733_v39  ;;  %v1795_v39 = vld [vmem:[#allocation12 + $0x14] sm:$0xf] }
  0x77   : > { %682 = vmatmul.bf16.vlgmr.msra.gmra.mxu0 %v2613_v40 }
  0x78   : > { %698 = vmatpush.bf16.msra.mxu1 %v1610_v28 }
  0x87   : > { %687 = vmatmul.bf16.gmra.mxu0 %v2616_v43 }
  0xf4   : > { %v683_v44 = vpop.f32.mrf.mxu0 }
  0xf5   : > { %v712_v45 = vpack.c.bf16 %v683_v44, %v683_v44  ;;  %v1602_v44 = vor.u32 %v1795_v39, %v1599_v41 }
  0xf7   : > { %833 = vmatpush.bf16.xpose.msrb.mxu0 %v712_v45  ;;  %v1591_v45 = vld [vmem:[#allocation12 + $0x8] sm:$0xf0]  ;;  %699 = vmatpush.bf16.msra.mxu1 %v1602_v44 }
  0xf9   : > { %v807_v46 = vpop.f32.mrf.mxu2 }
  0xfa   : > { %v818_v47 = vpack.c.bf16 %v807_v46, %v807_v46  ;;  %v812_v50 = vrot.slane %v807_v46, 2  ;;  %v813_v57 = vrot.slane %v807_v46, 4  ;;  %v814_v58 = vrot.slane %v807_v46, 6 }
  0xfb   : > { %v1594_v46 = vor.u32 %v1793_v42, %v1591_v45 }
  0xfc   : > { %v685_v48 = vpop.f32.mrf.mxu0  ;;  %v819_v52 = vpack.c.bf16 %v812_v50, %v812_v50  ;;  %v820_v59 = vpack.c.bf16 %v813_v57, %v813_v57  ;;  %v821_v60 = vpack.c.bf16 %v814_v58, %v814_v58 }
  0xfd   : > { %v713_v49 = vpack.c.bf16 %v685_v48, %v685_v48  ;;  %700 = vmatpush.bf16.msra.mxu1 %v1594_v46 }
  0xfe   : > { %834 = vmatmul.bf16.vlgmr.msrb.gmra.mxu0 %v818_v47 }
  0xff   : > { %846 = vmatpush.bf16.xpose.msra.mxu3 %v713_v49 }
 0x100   : > { %701 = vmatmul.bf16.vlgmr.msra.gmra.mxu1 %v2613_v40 }
 0x101   : > { %v809_v51 = vpop.f32.mrf.mxu2 }
 0x104   : > { %v688_v53 = vpop.f32.mrf.mxu0 }
 0x105   : > { %v714_v54 = vpack.c.bf16 %v688_v53, %v688_v53 }
 0x106   : > { %847 = vmatmul.bf16.vlgmr.msra.gmra.mxu3 %v819_v52 }
 0x107   : > { %859 = vmatpush.bf16.xpose.msrb.mxu3 %v714_v54 }
 0x10c   : > { %v690_v55 = vpop.f32.mrf.mxu0 }
 0x10d   : > { %v715_v56 = vpack.c.bf16 %v690_v55, %v690_v55 }
 0x10f   : > { %872 = vmatpush.bf16.xpose.msrb.mxu2 %v715_v56 }
 0x110   : > { %706 = vmatmul.bf16.gmra.mxu1 %v2616_v43 }
 0x116   : > { %860 = vmatmul.bf16.vlgmr.msrb.gmra.mxu3 %v820_v59  ;;  %873 = vmatmul.bf16.vlgmr.msrb.gmra.mxu2 %v821_v60 }
 0x17b   : > { %v835_v62 = vpop.f32.mrf.mxu0 }
 0x17c   : > { %v836_v63 = vadd.f32 %v835_v62, %v822_v61 }
 0x17d   : > { %v702_v1 = vpop.f32.mrf.mxu1 }
 0x17e   : > { %v879_v0 = vsel %vm878_vm0, %v836_v63, -inf  ;;  %v716_v2 = vpack.c.bf16 %v702_v1, %v702_v1 }
 0x17f   : > { %880 = vmax.xlane.f32.xlu0 %v879_v0 }
 0x180   : > { %v985_v3 = vsel %vm983_vm1, %v716_v2, 0 }
 0x181   : > { %994 = vmatpush.bf16.msra.mxu3 %v985_v3 }
 0x183   : > { %v837_v6 = vpop.f32.mrf.mxu0 }
 0x185   : > { %v704_v4 = vpop.f32.mrf.mxu1 }
 0x186   : > { %v717_v5 = vpack.c.bf16 %v704_v4, %v704_v4 }
 0x188   : > { %v1004_v6 = vsel %vm983_vm1, %v717_v5, 0 }
 0x189   : > { %v848_v12 = vpop.f32.mrf.mxu3  ;;  %1013 = vmatpush.bf16.msra.mxu0 %v1004_v6 }
 0x18a   : > { %v849_v19 = vadd.f32 %v848_v12, %v823_v10 }
 0x18c   : > { %v882_v20 = vsel %vm878_vm0, %v849_v19, -inf }
 0x18d   : > { %883 = vmax.xlane.f32.xlu1 %v882_v20  ;;  %v707_v7 = vpop.f32.mrf.mxu1 }
 0x18e   : > { %v718_v9 = vpack.c.bf16 %v707_v7, %v707_v7  ;;  %v1824_v7 = vld [vmem:[#allocation13 + $0x38] sm:$0xff] }
 0x18f   : > { %1135 = vmatpush.bf16.msrb.mxu3 %v1824_v7 }
 0x190   : > { %v1023_v20 = vsel %vm983_vm1, %v718_v9, 0  ;;  %v1822_v9 = vld [vmem:[#allocation13 + $0x28] sm:$0xff] }
 0x191   : > { %v850_v25 = vpop.f32.mrf.mxu3  ;;  %1032 = vmatpush.bf16.msrb.mxu1 %v1023_v20 }
 0x195   : > { %v709_v11 = vpop.f32.mrf.mxu1 }
 0x196   : > { %v719_v13 = vpack.c.bf16 %v709_v11, %v709_v11  ;;  %v1820_v11 = vld [vmem:[#allocation13 + $0x18] sm:$0xff] }
 0x199   : > { %v861_v31 = vpop.f32.mrf.mxu3  ;;  %v874_v32 = vpop.f32.mrf.mxu2 }
 0x19a   : > { %v862_v33 = vadd.f32 %v861_v31, %v824_v29  ;;  %v875_v34 = vadd.f32 %v874_v32, %v825_v30 }
 0x19c   : > { %v885_v35 = vsel %vm878_vm0, %v862_v33, -inf  ;;  %v888_v36 = vsel %vm878_vm0, %v875_v34, -inf }
 0x19d   : > { %886 = vmax.xlane.f32.xlu1 %v885_v35  ;;  %889 = vmax.xlane.f32.xlu0 %v888_v36 }
 0x1a1   : > { %v863_v37 = vpop.f32.mrf.mxu3  ;;  %v876_v38 = vpop.f32.mrf.mxu2 }
 0x1f2   : > { %v881_v47 = vpop.xlane.xlu0 %880 }
 0x1f3   : > { %v891_v48 = vsub.f32 %v836_v63, %v881_v47 }
 0x1f5   : > { %v895_v49 = vmul.f32 1.442695, %v891_v48 }
 0x1f7   : > { %1977 = vpow2.f32 %v895_v49 }
 0x1fd   : > { %v1978_v50 = vpop.eup %1977 }
 0x1fe   : > { %v903_v51 = vsel %vm878_vm0, %v1978_v50, 0.0 }
 0x1ff   : > { %904 = vadd.xlane.f32.xlu2 %v903_v51 }
 0x200   : > { %v884_v52 = vpop.xlane.xlu1 %883 }
 0x201   : > { %v892_v53 = vsub.f32 %v849_v19, %v884_v52  ;;  %v1042_v19 = vsel %vm983_vm1, %v719_v13, 0  ;;  %v1817_v13 = vld [vmem:[#allocation13] sm:$0xff] }
 0x202   : > { %1051 = vmatpush.bf16.msra.mxu2 %v1042_v19 }
 0x203   : > { %v897_v54 = vmul.f32 1.442695, %v892_v53 }
 0x205   : > { %1979 = vpow2.f32 %v897_v54 }
 0x20b   : > { %v2626_v55 = vpop.eup %1979 }
 0x20c   : > { %v906_v56 = vsel %vm878_vm0, %v2626_v55, 0.0 }
 0x20d   : > { %907 = vadd.xlane.f32.xlu0 %v906_v56 }
 0x210   : > { %v887_v40 = vpop.xlane.xlu1 %886  ;;  %v890_v43 = vpop.xlane.xlu0 %889 }
 0x211   : > { %v893_v57 = vsub.f32 %v862_v33, %v887_v40  ;;  %v894_v58 = vsub.f32 %v875_v34, %v890_v43 }
 0x213   : > { %v899_v59 = vmul.f32 1.442695, %v893_v57  ;;  %v901_v60 = vmul.f32 1.442695, %v894_v58 }
 0x215   : > { %1981 = vpow2.f32 %v899_v59 }
 0x216   : > { %1983 = vpow2.f32 %v901_v60 }
 0x21b   : > { %v2630_v61 = vpop.eup %1981 }
 0x21c   : > { %v2632_v62 = vpop.eup %1983  ;;  %v909_v63 = vsel %vm878_vm0, %v2630_v61, 0.0 }
 0x21d   : > { %910 = vadd.xlane.f32.xlu1 %v909_v63  ;;  %v912_v0 = vsel %vm878_vm0, %v2632_v62, 0.0 }
 0x21e   : > { %913 = vadd.xlane.f32.xlu2 %v912_v0 }
 0x272   : > { %v905_v8 = vpop.xlane.xlu2 %904 }
 0x273   : > { %1985 = vrcp.f32 %v905_v8  ;;  %v926_v21 = vand.u32 2147483648, %v905_v8  ;;  %v924_v23 = vand.u32 2147483647, %v905_v8  ;;  %vm920_vm3 = vweird.f32 %v905_v8 }
 0x275   : > { %v927_v26 = vor.u32 1.1754944e-38, %v926_v21  ;;  %vm925_vm5 = vcmp.eq.f32.partialorder %v924_v23, 8.507059e+37 }
 0x279   : > { %v1986_v10 = vpop.eup %1985 }
 0x27a   : > { %v916_v12 = vmul.f32 %v1986_v10, %v905_v8  ;;  %vm921_vm2 = vweird.f32 %v1986_v10  ;;  %v1823_v8 = vld [vmem:[#allocation13 + $0x30] sm:$0xff] }
 0x27b   : > { %vm922_vm4 = vmor %vm920_vm3, %vm921_vm2  ;;  %1136 = vmatpush.bf16.msrb.mxu3 %v1823_v8 }
 0x27c   : > { %v917_v17 = vsub.f32 1.0, %v916_v12  ;;  %v1819_v12 = vld [vmem:[#allocation13 + $0x10] sm:$0xff] }
 0x27e   : > { %v918_v22 = vmul.f32 %v1986_v10, %v917_v17 }
 0x27f   : > { %1137 = vmatpush.bf16.msrb.mxu3 %v1822_v9 }
 0x280   : > { %v919_v24 = vadd.f32 %v1986_v10, %v918_v22  ;;  %v908_v25 = vpop.xlane.xlu0 %907 }
 0x281   : > { %1987 = vrcp.f32 %v908_v25  ;;  %v941_v34 = vand.u32 2147483648, %v908_v25  ;;  %v939_v36 = vand.u32 2147483647, %v908_v25  ;;  %vm935_vm8 = vweird.f32 %v908_v25 }
 0x282   : > { %v923_v27 = vsel %vm922_vm4, %v1986_v10, %v919_v24  ;;  %v1821_v10 = vld [vmem:[#allocation13 + $0x20] sm:$0xff] }
 0x283   : > { %v928_v28 = vsel %vm925_vm5, %v927_v26, %v923_v27  ;;  %v942_v38 = vor.u32 1.1754944e-38, %v941_v34  ;;  %vm940_vm10 = vcmp.eq.f32.partialorder %v939_v36, 8.507059e+37  ;;  %1138 = vmatpush.bf16.msrb.mxu3 %v1821_v10 }
 0x284   : > { %v929_v29 = vmul.f32 %v1978_v50, %v928_v28 }
 0x286   : > { %v975_v30 = vpack.c.bf16 %v929_v29, %v929_v29 }
 0x287   : > { %v1988_v31 = vpop.eup %1987  ;;  %1139 = vmatpush.bf16.msrb.mxu3 %v1820_v11 }
 0x288   : > { %v931_v32 = vmul.f32 %v1988_v31, %v908_v25  ;;  %1683 = vmatmul.msk.bf16.vlgmr.msra.gmra.mxu3 %vm979_vm6, %v975_v30  ;;  %vm936_vm7 = vweird.f32 %v1988_v31 }
 0x289   : > { %vm937_vm9 = vmor %vm935_vm8, %vm936_vm7 }
 0x28a   : > { %v932_v33 = vsub.f32 1.0, %v931_v32 }
 0x28b   : > { %1140 = vmatpush.bf16.msrb.mxu3 %v1819_v12 }
 0x28c   : > { %v933_v35 = vmul.f32 %v1988_v31, %v932_v33 }
 0x28e   : > { %v934_v37 = vadd.f32 %v1988_v31, %v933_v35 }
 0x290   : > { %v938_v39 = vsel %vm937_vm9, %v1988_v31, %v934_v37  ;;  %v911_v41 = vpop.xlane.xlu1 %910 }
 0x291   : > { %v943_v42 = vsel %vm940_vm10, %v942_v38, %v938_v39  ;;  %1989 = vrcp.f32 %v911_v41  ;;  %v914_v44 = vpop.xlane.xlu2 %913  ;;  %v956_v52 = vand.u32 2147483648, %v911_v41  ;;  %v954_v56 = vand.u32 2147483647, %v911_v41 }
 0x292   : > { %v944_v45 = vmul.f32 %v2626_v55, %v943_v42  ;;  %1991 = vrcp.f32 %v914_v44  ;;  %v971_v40 = vand.u32 2147483648, %v914_v44  ;;  %v969_v57 = vand.u32 2147483647, %v914_v44 }
 0x293   : > { %vm950_vm13 = vweird.f32 %v911_v41  ;;  %v957_v55 = vor.u32 1.1754944e-38, %v956_v52  ;;  %vm965_vm15 = vweird.f32 %v914_v44  ;;  %vm955_vm0 = vcmp.eq.f32.partialorder %v954_v56, 8.507059e+37 }
 0x294   : > { %v976_v46 = vpack.c.bf16 %v944_v45, %v944_v45  ;;  %v972_v63 = vor.u32 1.1754944e-38, %v971_v40  ;;  %vm970_vm2 = vcmp.eq.f32.partialorder %v969_v57, 8.507059e+37 }
 0x296   : > { %1684 = vmatmul.msk.bf16.vlgmr.msra.gmra.mxu0 %vm979_vm6, %v976_v46 }
 0x297   : > { %v1990_v47 = vpop.eup %1989 }
 0x298   : > { %v1992_v48 = vpop.eup %1991  ;;  %v946_v49 = vmul.f32 %v1990_v47, %v911_v41  ;;  %vm951_vm11 = vweird.f32 %v1990_v47 }
 0x299   : > { %v961_v50 = vmul.f32 %v1992_v48, %v914_v44  ;;  %vm966_vm12 = vweird.f32 %v1992_v48  ;;  %vm952_vm14 = vmor %vm950_vm13, %vm951_vm11 }
 0x29a   : > { %v947_v51 = vsub.f32 1.0, %v946_v49  ;;  %vm967_vm1 = vmor %vm965_vm15, %vm966_vm12 }
 0x29b   : > { %v962_v53 = vsub.f32 1.0, %v961_v50 }
 0x29c   : > { %v948_v54 = vmul.f32 %v1990_v47, %v947_v51 }
 0x29d   : > { %v963_v43 = vmul.f32 %v1992_v48, %v962_v53 }
 0x29e   : > { %v949_v58 = vadd.f32 %v1990_v47, %v948_v54 }
 0x29f   : > { %v964_v59 = vadd.f32 %v1992_v48, %v963_v43 }
 0x2a0   : > { %v953_v60 = vsel %vm952_vm14, %v1990_v47, %v949_v58 }
 0x2a1   : > { %v958_v0 = vsel %vm955_vm0, %v957_v55, %v953_v60  ;;  %v968_v1 = vsel %vm967_vm1, %v1992_v48, %v964_v59 }
 0x2a2   : > { %v973_v2 = vsel %vm970_vm2, %v972_v63, %v968_v1  ;;  %v959_v3 = vmul.f32 %v2630_v61, %v958_v0 }
 0x2a3   : > { %v974_v4 = vmul.f32 %v2632_v62, %v973_v2  ;;  %v1818_v62 = vld [vmem:[#allocation13 + $0x8] sm:$0xff] }
 0x2a4   : > { %v977_v5 = vpack.c.bf16 %v959_v3, %v959_v3  ;;  %1141 = vmatpush.bf16.msrb.mxu3 %v1818_v62 }
 0x2a5   : > { %v978_v6 = vpack.c.bf16 %v974_v4, %v974_v4 }
 0x2a6   : > { %1685 = vmatmul.msk.bf16.vlgmr.msrb.gmra.mxu1 %vm979_vm6, %v977_v5 }
 0x2a7   : > { %1686 = vmatmul.msk.bf16.vlgmr.msra.gmra.mxu2 %vm979_vm6, %v978_v6 }
 0x2a8   : > { %1142 = vmatpush.bf16.msrb.mxu3 %v1817_v13 }
 0x30b   : > { %v996_v61 = vpop.f32.mrf.mxu3 }
 0x30c   : > { %1061 = vst [vmem:[#allocation1] ss:$4 sm:$0xff] %v996_v61 }
 0x313   : > { %v998_v17 = vpop.f32.mrf.mxu3  ;;  %v1015_v19 = vpop.f32.mrf.mxu0 }
 0x314   : > { %1063 = vst [vmem:[#allocation1 + $0x1] ss:$4 sm:$0xff] %v1015_v19 }
 0x31b   : > { %v1017_v20 = vpop.f32.mrf.mxu0 }
 0x323   : > { %v1034_v21 = vpop.f32.mrf.mxu1 }
 0x324   : > { %1065 = vst [vmem:[#allocation1 + $0x2] ss:$4 sm:$0xff] %v1034_v21 }
 0x32a   : > { %v1053_v22 = vpop.f32.mrf.mxu2 }
 0x32b   : > { %1067 = vst [vmem:[#allocation1 + $0x3] ss:$4 sm:$0xff] %v1053_v22  ;;  %v1036_v23 = vpop.f32.mrf.mxu1 }
 0x332   : > { %v1055_v24 = vpop.f32.mrf.mxu2  ;;  %v1068_v25 = vld.sshfl [vmem:[#allocation1] sm:$0xff pattern:$0x73625140] }
 0x333   : > { %v1070_v26 = vpack.c.bf16 %v1068_v25, %v1068_v25 }
 0x335   : > { %1143 = vmatmul.bf16.vlgmr.msrb.gmra.mxu3 %v1070_v26 }
 0x3b8   : > { %v1144_v27 = vpop.f32.mrf.mxu3 }
 0x3b9   : > { %v1149_v28 = vrot.slane %v1144_v27, 2  ;;  %v1150_v29 = vrot.slane %v1144_v27, 4  ;;  %v1151_v30 = vrot.slane %v1144_v27, 6  ;;  %v1155_v31 = vadd.f32 %v1144_v27, %v2601_v14 }
 0x3bb   : > { %v1156_v32 = vadd.f32 %v1149_v28, %v2603_v15  ;;  %v1157_v33 = vadd.f32 %v1150_v29, %v2605_v16  ;;  %v1158_v34 = vadd.f32 %v1151_v30, %v2607_v18  ;;  %1163 = vst [vmem:[#allocation1] ss:$4 sm:$0xff] %v1155_v31 }
 0x3bd   : > { %1165 = vst [vmem:[#allocation1 + $0x1] ss:$4 sm:$0xff] %v1156_v32 }
 0x3be   : > { %1167 = vst [vmem:[#allocation1 + $0x2] ss:$4 sm:$0xff] %v1157_v33 }
 0x3bf   : > { %1169 = vst [vmem:[#allocation1 + $0x3] ss:$4 sm:$0xff] %v1158_v34 }
 0x3c0   : > { %v1146_v35 = vpop.f32.mrf.mxu3 }
 0x3c6   : > { %v1170_v36 = vld.sshfl [vmem:[#allocation1] sm:$0xff pattern:$0x73625140] }
 0x3c7   : > { %1172 = vst [vmem:[#allocation2] sm:$0xff] %v1170_v36 }
 0x3c8   : > { %1173 = vst [vmem:[#allocation1] ss:$4 sm:$0xff] %v1155_v31 }
 0x3c9   : > { %1175 = vst [vmem:[#allocation1 + $0x1] ss:$4 sm:$0xff] %v1156_v32 }
 0x3ca   : > { %1177 = vst [vmem:[#allocation1 + $0x2] ss:$4 sm:$0xff] %v1157_v33 }
 0x3cb   : > { %1179 = vst [vmem:[#allocation1 + $0x3] ss:$4 sm:$0xff] %v1158_v34 }
 0x3d2   : > { %v1180_v37 = vld.sshfl [vmem:[#allocation1] sm:$0xff pattern:$0x73625140] }
 0x3d3   : > { %1182 = vst [vmem:[#allocation3] sm:$0xff] %v1180_v37 }
 0x3d4 PF: > { %v1832_v14 = vld [vmem:[%s2584_s21 + $0x38] sm:$0xff]  ;;  %v1831_v15 = vld [vmem:[%s2584_s21 + $0x30] sm:$0xff]  ;;  %v1830_v18 = vld [vmem:[%s2584_s21 + $0x28] sm:$0xff]  ;;  %p1783_p3 = scmp.ne.s32.totalorder %s2327_s16, 1 }
 0x3d5   : > { %1253 = vmatpush.bf16.msra.mxu0 %v1832_v14  ;;  %v1840_v16 = vld [vmem:[%s2598_s11 + $0x38] sm:$0xff]  ;;  %v1829_v38 = vld [vmem:[%s2584_s21 + $0x20] sm:$0xff]  ;;  %v1827_v41 = vld [vmem:[%s2584_s21 + $0x10] sm:$0xff] }
 0x3d6   : > { %1341 = vmatpush.bf16.msra.mxu1 %v1840_v16  ;;  %v1828_v39 = vld [vmem:[%s2584_s21 + $0x18] sm:$0xff]  ;;  %v1826_v42 = vld [vmem:[%s2584_s21 + $0x8] sm:$0xff]  ;;  %v1825_v44 = vld [vmem:[%s2584_s21] sm:$0xff] }
 0x3d7   : > { %v1183_v45 = vld [vmem:[#allocation2] sm:$0xff]  ;;  %v1839_v47 = vld [vmem:[%s2598_s11 + $0x30] sm:$0xff]  ;;  %v1838_v48 = vld [vmem:[%s2598_s11 + $0x28] sm:$0xff] }
 0x3d8   : > { %v1184_v46 = vpack.c.bf16 %v1183_v45, %v1183_v45  ;;  %v1837_v49 = vld [vmem:[%s2598_s11 + $0x20] sm:$0xff]  ;;  %v1836_v50 = vld [vmem:[%s2598_s11 + $0x18] sm:$0xff]  ;;  %v1835_v51 = vld [vmem:[%s2598_s11 + $0x10] sm:$0xff] }
 0x3d9   : > { %1254 = vmatpush.bf16.msra.mxu0 %v1831_v15  ;;  %v1834_v52 = vld [vmem:[%s2598_s11 + $0x8] sm:$0xff]  ;;  %v1833_v53 = vld [vmem:[%s2598_s11] sm:$0xff]  ;;  %v1993_v54 = vld [vmem:[%s560_s0] ss:$0 sm:$0xff] }
 0x3da   : > { %1342 = vmatpush.bf16.msra.mxu1 %v1839_v47  ;;  %v1275_v4 = vld [vmem:[#allocation3] sm:$0xff] }
 0x3dd   : > { %1255 = vmatpush.bf16.msra.mxu0 %v1830_v18 }
 0x3de   : > { %1343 = vmatpush.bf16.msra.mxu1 %v1838_v48 }
 0x3e1   : > { %1256 = vmatpush.bf16.msra.mxu0 %v1829_v38 }
 0x3e2   : > { %1344 = vmatpush.bf16.msra.mxu1 %v1837_v49 }
 0x3e5   : > { %1257 = vmatpush.bf16.msra.mxu0 %v1828_v39 }
 0x3e6   : > { %1345 = vmatpush.bf16.msra.mxu1 %v1836_v50 }
 0x3e9   : > { %1258 = vmatpush.bf16.msra.mxu0 %v1827_v41 }
 0x3ea   : > { %1346 = vmatpush.bf16.msra.mxu1 %v1835_v51 }
 0x3ed   : > { %1259 = vmatpush.bf16.msra.mxu0 %v1826_v42 }
 0x3ee   : > { %1347 = vmatpush.bf16.msra.mxu1 %v1834_v52 }
 0x3f1   : > { %1260 = vmatpush.bf16.msra.mxu0 %v1825_v44 }
 0x3f2   : > { %1348 = vmatpush.bf16.msra.mxu1 %v1833_v53 }
 0x3f4   : > { %1261 = vmatmul.bf16.vlgmr.msra.gmra.mxu0 %v1184_v46 }
 0x471   : > { %v1262_v56 = vpop.f32.mrf.mxu0 }
 0x472   : > { %v1263_v40 = vadd.f32 %v1993_v54, %v1262_v56 }
 0x474   : > { %v1266_v43 = vmul.f32 %v1263_v40, %v1263_v40 }
 0x476   : > { %v1267_v57 = vmul.f32 %v1266_v43, %v1263_v40 }
 0x478   : > { %v1268_v58 = vmul.f32 0.044715, %v1267_v57 }
 0x479   : > { %v1264_v55 = vpop.f32.mrf.mxu0 }
 0x47a   : > { %v1269_v59 = vadd.f32 %v1268_v58, %v1263_v40 }
 0x47c   : > { %v1270_v60 = vmul.f32 0.7978846, %v1269_v59 }
 0x47e   : > { %1994 = vtanh.f32 %v1270_v60 }
 0x484   : > { %v1995_v63 = vpop.eup %1994 }
 0x485   : > { %v1272_v0 = vadd.f32 1.0, %v1995_v63 }
 0x487   : > { %v1273_v1 = vmul.f32 0.5, %v1272_v0 }
 0x489   : > { %v1274_v2 = vmul.f32 %v1273_v1, %v1263_v40 }
 0x48b   : > { %v1276_v3 = vpack.c.bf16 %v1274_v2, %v1274_v2 }
 0x48d   : > { %1349 = vmatmul.bf16.vlgmr.msra.gmra.mxu1 %v1276_v3 }
 0x50a   : > { %v1350_v5 = vpop.f32.mrf.mxu1 }
 0x50b   : > { %v1354_v6 = vadd.f32 %v1350_v5, %v1275_v4 }
 0x50d   : > { %1355 = vst [vmem:[#allocation3] sm:$0xff] %v1354_v6 }
 0x50e   : > { %1359 = sbr.rel (%p1783_p3) target bundleno = 1314 (0x522), region = 100 }
 0x512   : > { %v1352_v7 = vpop.f32.mrf.mxu1 }
 0x513   : > { %v1996_v9 = vld [vmem:[%s2709_s9] ss:$0 sm:$0xff] }
 0x514   : > { %v1360_v8 = vld [vmem:[#allocation3] sm:$0xff] }
 0x515   : > { %v1365_v10 = vadd.f32 %v1996_v9, %v1360_v8 }
 0x517   : > { %v1784_v11 = vrot.slane %v1365_v10, 9  ;;  %v1367_v12 = vrot.slane %v1365_v10, 2  ;;  %v1368_v61 = vrot.slane %v1365_v10, 4  ;;  %v1369_v62 = vrot.slane %v1365_v10, 6 }
 0x519   : > { %v1385_v13 = vadd.f32 %v1784_v11, %v1365_v10  ;;  %v1785_v17 = vrot.slane %v1367_v12, 9  ;;  %v1786_v19 = vrot.slane %v1368_v61, 9  ;;  %v1787_v20 = vrot.slane %v1369_v62, 9 }
 0x51b   : > { %v1389_v21 = vmul.f32 0.5, %v1385_v13  ;;  %v1386_v22 = vadd.f32 %v1785_v17, %v1367_v12  ;;  %v1387_v23 = vadd.f32 %v1786_v19, %v1368_v61  ;;  %v1388_v24 = vadd.f32 %v1787_v20, %v1369_v62 }
 0x51d   : > { %1393 = vst [vmem:[#allocation17] sm:$0x1] %v1389_v21  ;;  %v1390_v25 = vmul.f32 0.5, %v1386_v22  ;;  %v1391_v26 = vmul.f32 0.5, %v1387_v23  ;;  %v1392_v27 = vmul.f32 0.5, %v1388_v24 }
 0x51f   : > { %1394 = vst [vmem:[#allocation17 + $0x1] sm:$0x1] %v1390_v25 }
 0x520   : > { %1395 = vst [vmem:[#allocation17 + $0x2] sm:$0x1] %v1391_v26 }
 0x521   : > { %1396 = vst [vmem:[#allocation17 + $0x3] sm:$0x1] %v1392_v27 }
 0x522 PF: > { %p1912_p4 = scmp.eq.s32.totalorder %s2438_s19, 1  ;;  %s2751_s6 = sld [smem:[#allocation34_spill]] }
 0x523   : > { %s2349_s2 = smov [#allocation17]   ;;  %s2350_s24 = smov 16  }
 0x524   : > { %s1404_s18 = sshll.u32 %s2349_s2, 4  ;;  %s2351_s13 = smov 1   ;;  %s1405_s18 = int_to_ptr.vmem [resolvable:$true] %s1404_s18 }
 0x528   : > { %s1406_s15 = sshll.u32 %s2751_s6, 4  ;;  %s1407_s15 = int_to_ptr.hbm [resolvable:$true] %s1406_s15 }
 0x529   : > { %1870 = dma.vmem_to_hbm [thread:$0]  (%p1912_p4), %s1405_s18, 64, %s1407_s15, [#allocation6], %s2350_s24, %s2350_s24, %s2351_s13  }
 0x52a   : > { %2310 = dma.done.wait (%p1912_p4), [#allocation6], 64  }
 0x52b   : > { %2312 = vsyncadd (%p1912_p4), [#allocation6], 4294967232 }
 0x52c PF: > { %s2752_s25 = sld [smem:[#allocation25_spill]]  ;;  %s2756_s13 = smov %s2319_s14 }
 0x52d   : > { %s2753_s12 = sld [smem:[#allocation24_spill]]  ;;  %s2758_s16 = smov %s2331_s17 }
 0x52e   : > { %s2754_s15 = sld [smem:[#allocation27_spill]] }
 0x52f   : > { %s2755_s19 = sld [smem:[#allocation26_spill]] }
 0x532   : > { %s25_s18 = sadd.s32 1, %s2752_s25  }
 0x533   : > { %p22_p5 = scmp.ge.s32.totalorder %s25_s18, 4   ;;  %s2757_s14 = smov %s2753_s12 }
 0x535   : > { %s2759_s17 = smov %s2755_s19  ;;  %24 = sbr.rel (!%p22_p5) target bundleno = 15 (0xf), region = 158 }
 0x53a   :  { %1423 = vsyncpa [#allocation5], 1 }
 0x53b   :  { %1425 = vsyncpa [#allocation5 + $0x1], 1 }
 0x53c   :  { %1426 = vsyncpa [#allocation8], 1 }
 0x53d   :  { %1427 = vsyncpa [#allocation11], 1 }
 0x53e   :  { %1428 = vsyncpa [#allocation14], 1 }
 0x53f   :  { %1429 = vsyncpa [#allocation6], 1 }
 0x540   :  { %1431 = vsyncpa [#allocation6 + $0x1], 1 }

</bundles_post_ra>
